<compile_context>
chip_gen: v7x
topology: tpu7x:2x2x1
jax: 0.10.0
libtpu: 0.0.40
codegen_flags: <defaults>
</compile_context>

<pallas_src>
import functools

import jax
import jax.numpy as jnp
from jax.experimental import pallas as pl
from jax.experimental.pallas import tpu as pltpu


# --------------------------------------------------------------------------
# helpers
# --------------------------------------------------------------------------
def _vmem_capacity_bytes():
    """Physical per-core VMEM; conservative (v7x) fallback if query fails."""
    try:
        cap = getattr(pltpu.get_tpu_info(), "vmem_capacity_bytes", None)
        if cap:
            return int(cap)
    except Exception:
        pass
    return 64 << 20  # v7x per-TensorCore VMEM (smallest of v5e/v6e/v7x)


def _fits_resident(n, d, itemsize, cap):
    """Can the fused single-pass kernel hold everything in VMEM?"""
    # x (double-buffered) + f32 working copy + relayout temps (~2*n*n*4)
    # + out (double-buffered) + fusion slack.
    need = (2 * n * d * itemsize) + (n * d * 4) + (2 * n * n * 4) \
         + (2 * n * d * itemsize) + (n * d * 4)
    return need <= int(0.70 * cap)


def _pick_row_tile(n, d, itemsize, cap):
    """Row tile for the streaming path: multiple of 128, >=2 grid steps."""
    target = (8 << 20) if cap >= (128 << 20) else (4 << 20)  # smaller on v7x
    tm = max(128, ((target // max(1, d * itemsize)) // 128) * 128)
    # Guarantee >= 2 grid steps so both v7x TensorCores get work (no-op 1-TC).
    tm = min(tm, max(128, ((n // 2) // 128) * 128))
    return min(tm, 2048)


def _col_to_row(col):
    """Relayout an (m, 1) f32 column vector into a (1, m) lane vector.

    iota-mask + sublane reduce: only guaranteed-lowerable primitives, and the
    select (vs multiply) keeps inf/nan of row i confined to lane i.
    """
    m = col.shape[0]
    row_idx = jax.lax.broadcasted_iota(jnp.int32, (m, 1), 0)
    col_idx = jax.lax.broadcasted_iota(jnp.int32, (1, m), 1)
    return jnp.sum(jnp.where(row_idx == col_idx, col, 0.0),
                   axis=0, keepdims=True)


# --------------------------------------------------------------------------
# kernels
# --------------------------------------------------------------------------
def _rmsnorm_resident_kernel(x_ref, o_ref):
    """Fused single pass: x resident in VMEM, read once, write once."""
    x = x_ref[...].astype(jnp.float32)                      # (n, d)
    sumsq = jnp.sum(x * x, axis=-1, keepdims=True)          # (n, 1)
    inv_row = _col_to_row(jax.lax.rsqrt(sumsq))             # (1, n)  EUP rsqrt
    # NOTE: no eps, matching the reference forward() exactly (zero row -> inf/nan).
    o_ref[...] = (x * inv_row).astype(o_ref.dtype)


def _row_inv_norm_kernel(x_ref, inv_ref):
    """Streaming pass 1: lane-dense (1, tm) block of 1/||row||_2."""
    x = x_ref[...].astype(jnp.float32)                      # (tm, d)
    sumsq = jnp.sum(x * x, axis=-1, keepdims=True)          # (tm, 1)
    inv_ref[...] = _col_to_row(jax.lax.rsqrt(sumsq))        # (1, tm) lane-dense


def _apply_inv_norm_kernel(x_ref, inv_ref, o_ref):
    """Streaming pass 2: o[r, c] = x[r, c] * inv[0, c] (lane broadcast)."""
    x = x_ref[...].astype(jnp.float32)
    o_ref[...] = (x * inv_ref[...]).astype(o_ref.dtype)


# --------------------------------------------------------------------------
# wrapper
# --------------------------------------------------------------------------
def rmsnorm_forward(x, scale=None, eps=1e-6, *, force_streaming=False):
    """Matches the PyTorch module's forward() exactly.

    `scale` / `eps` are module attributes that forward() never uses; accepted
    only for interface parity.
    """
    del scale, eps  # unused by the reference forward()
    n, d = x.shape
    # The reference `x / norm` (no keepdim) only broadcasts when N == D or N == 1.
    assert n == d or n == 1, "reference broadcast requires N == D (or N == 1)"

    itemsize = jnp.dtype(x.dtype).itemsize
    cap = _vmem_capacity_bytes()

    # ---- Path A: fully VMEM-resident fused single pass ----------------------
    if (n == 1 or _fits_resident(n, d, itemsize, cap)) and not force_streaming:
        return pl.pallas_call(
            _rmsnorm_resident_kernel,
            out_shape=jax.ShapeDtypeStruct((n, d), x.dtype),
            compiler_params=pltpu.CompilerParams(
                vmem_limit_bytes=min(int(0.85 * cap), 100 << 20)),
            cost_estimate=pl.CostEstimate(
                flops=3 * n * d + n * n, transcendentals=n,
                bytes_accessed=2 * n * d * itemsize),
        )(x)

    # ---- Path B: row-tiled, double-buffered two-pass streaming --------------
    tm = _pick_row_tile(n, d, itemsize, cap)
    grid = (pl.cdiv(n, tm),)                    # ragged last block handled
    params = pltpu.CompilerParams(
        dimension_semantics=("parallel",),
        vmem_limit_bytes=min(int(0.75 * cap), 100 << 20))

    # pass 1: lane-dense (1, N) inverse row norms (no external relayout op).
    inv_row = pl.pallas_call(
        _row_inv_norm_kernel,
        out_shape=jax.ShapeDtypeStruct((1, n), jnp.float32),
        grid=grid,
        in_specs=[pl.BlockSpec((tm, d), lambda i: (i, 0))],
        out_specs=pl.BlockSpec((1, tm), lambda i: (0, i)),
        compiler_params=params,
        cost_estimate=pl.CostEstimate(
            flops=2 * n * d + n * tm, transcendentals=n,
            bytes_accessed=n * d * itemsize + n * 4),
    )(x)

    # pass 2: lane-broadcast multiply; inv_row stays VMEM-resident across grid.
    return pl.pallas_call(
        _apply_inv_norm_kernel,
        out_shape=jax.ShapeDtypeStruct((n, d), x.dtype),
        grid=grid,
        in_specs=[
            pl.BlockSpec((tm, d), lambda i: (i, 0)),
            pl.BlockSpec((1, n), lambda i: (0, 0)),      # resident across grid
        ],
        out_specs=pl.BlockSpec((tm, d), lambda i: (i, 0)),
        compiler_params=params,
        cost_estimate=pl.CostEstimate(
            flops=n * d, transcendentals=0,
            bytes_accessed=2 * n * d * itemsize + n * 4),
    )(x, inv_row)


# --------------------------------------------------------------------------
# self-test
# --------------------------------------------------------------------------
if __name__ == "__main__":
    k1, k2, k3 = jax.random.split(jax.random.PRNGKey(0), 3)

    fwd = jax.jit(rmsnorm_forward)

    # The reference forward's `x / norm` broadcast requires a square input.
    dim = 256                                             # lane-dense (multiple of 128)
    x = jax.random.normal(k1, (dim, dim), dtype=jnp.float32)
    scale = jnp.ones((dim,), dtype=jnp.float32)           # module param, unused by forward()
    out = jax.block_until_ready(fwd(x, scale))
    ref = x / jnp.linalg.norm(x, axis=-1)                 # same right-aligned broadcast as torch
    assert out.shape == x.shape and out.dtype == x.dtype
    assert jnp.allclose(out, ref, atol=1e-5, rtol=1e-5)

    # Larger square case (still VMEM-resident on all generations).
    dim2 = 1024
    x2 = jax.random.normal(k2, (dim2, dim2), dtype=jnp.float32)
    out2 = jax.block_until_ready(fwd(x2, jnp.ones((dim2,), jnp.float32)))
    ref2 = x2 / jnp.linalg.norm(x2, axis=-1)
    assert jnp.allclose(out2, ref2, atol=1e-5, rtol=1e-5)

    # Exercise the streaming (two-pass, lane-dense) path explicitly at a small
    # shape so that code path is validated on-chip too.
    fwd_stream = jax.jit(functools.partial(rmsnorm_forward, force_streaming=True))
    dim3 = 512
    x3 = jax.random.normal(k3, (dim3, dim3), dtype=jnp.float32)
    out3 = jax.block_until_ready(fwd_stream(x3, jnp.ones((dim3,), jnp.float32)))
    ref3 = x3 / jnp.linalg.norm(x3, axis=-1)
    assert jnp.allclose(out3, ref3, atol=1e-5, rtol=1e-5)

    print("KERNEL_OK")
</pallas_src>

<mosaic_0001>
module attributes {stable_mosaic.version = 11 : i64} {
  func.func @_rmsnorm_resident_kernel(%arg0: memref<256x256xf32, #tpu.memory_space<vmem>>, %arg1: memref<256x256xf32, #tpu.memory_space<vmem>>) attributes {dimension_semantics = [], scalar_prefetch = 0 : i64, scratch_operands = 0 : i64, tpu.core_type = #tpu.core_type<tc>} {
    %c0 = arith.constant 0 : index
    %c0_0 = arith.constant 0 : index
    %0 = vector.load %arg0[%c0, %c0_0] : memref<256x256xf32, #tpu.memory_space<vmem>>, vector<256x256xf32>
    %1 = arith.mulf %0, %0 : vector<256x256xf32>
    %cst = arith.constant dense<0.000000e+00> : vector<256xf32>
    %2 = vector.multi_reduction <add>, %1, %cst [1] : vector<256x256xf32> to vector<256xf32>
    %3 = vector.shape_cast %2 : vector<256xf32> to vector<256x1xf32>
    %4 = math.rsqrt %3 : vector<256x1xf32>
    %5 = tpu.iota {dimensions = array<i32: 0>} : vector<256x1xi32>
    %6 = tpu.iota {dimensions = array<i32: 1>} : vector<1x256xi32>
    %7 = vector.broadcast %5 : vector<256x1xi32> to vector<256x256xi32>
    %8 = vector.broadcast %6 : vector<1x256xi32> to vector<256x256xi32>
    %9 = arith.cmpi eq, %7, %8 : vector<256x256xi32>
    %cst_1 = arith.constant 0.000000e+00 : f32
    %10 = vector.shape_cast %4 : vector<256x1xf32> to vector<256x1xf32>
    %11 = vector.broadcast %10 : vector<256x1xf32> to vector<256x256xf32>
    %12 = vector.broadcast %cst_1 : f32 to vector<256x256xf32>
    %13 = arith.select %9, %11, %12 : vector<256x256xi1>, vector<256x256xf32>
    %cst_2 = arith.constant dense<0.000000e+00> : vector<256xf32>
    %14 = vector.multi_reduction <add>, %13, %cst_2 [0] : vector<256x256xf32> to vector<256xf32>
    %15 = vector.shape_cast %14 : vector<256xf32> to vector<1x256xf32>
    %16 = vector.broadcast %15 : vector<1x256xf32> to vector<256x256xf32>
    %17 = arith.mulf %0, %16 : vector<256x256xf32>
    %c0_3 = arith.constant 0 : index
    %c0_4 = arith.constant 0 : index
    %18 = vector.load %arg1[%c0_3, %c0_4] : memref<256x256xf32, #tpu.memory_space<vmem>>, vector<256x256xf32>
    tpu.vector_store %arg1[%c0_3, %c0_4], %17 {strides = array<i32>} : memref<256x256xf32, #tpu.memory_space<vmem>>, vector<256x256xf32>,
    return
  }
}

</mosaic_0001>

<bundles_post_ra>
// kernel: rmsnorm_forward.1
= control target key start
LH: loop header
LB: loop body
LE: loop exit
PB: predicated region body
PF: predicated region fallthrough
CT: control target
= control target key end

     0   :  { %6 = vsyncpa [#allocation3], 0  ;;  %s1348_s0 = inlined_call_operand.hbm [shape: f32[256,256], index: 0, kind: input, shape index: {}]   ;;  %s1349_s1 = inlined_call_operand.hbm [shape: f32[256,256], index: 1, kind: output, shape index: {}]  }
   0x1   :  { %7 = vsyncpa [#allocation4], 0  ;;  %s780_s6 = smov [#allocation2]   ;;  %s732_s10 = scalar_lea.hbm %s1348_s0, 8192 }
   0x2   :  { %s13_s7 = sshll.u32 %s780_s6, 4  ;;  %p733_p0 = scmp.ne.s32.totalorder %s1348_s0, %s732_s10  ;;  %s14_s7 = int_to_ptr.vmem [resolvable:$true] %s13_s7 }
   0x3   :  { %p736_p1 = scmp.lt.u32.totalorder %s732_s10, %s1348_s0 }
   0x5   :  { %p738_p2 = pnand %p736_p1, %p733_p0 }
   0x7   :  { %741 = shalt.err (!%p738_p2)
}
   0x8   :  { %s742_s15 = scalar_lea.vmem %s14_s7, 8192  ;;  %p747_p4 = scmp.lt.s32.totalorder %s14_s7, %s14_s7 }
   0x9   :  { %p743_p3 = scmp.ne.s32.totalorder %s14_s7, %s742_s15  ;;  %p748_p5 = scmp.lt.s32.totalorder %s742_s15, %s742_s15 }
   0xb   :  { %p749_p6 = por %p748_p5, %p747_p4 }
   0xd   :  { %p750_p7 = pnand %p749_p6, %p743_p3 }
   0xf   :  { %753 = shalt.err (!%p750_p7)
}
  0x10   :  { %s781_s16 = smov 256   ;;  %s782_s17 = smov 16  }
  0x11   :  { %19 = dma.hbm_to_vmem [thread:$0]  %s1348_s0, 8192, %s14_s7, [#allocation3], %s781_s16, %s781_s16, %s782_s17  }
  0x12   :  { %776 = dma.done.wait [#allocation3], 8192  }
  0x13   :  { %777 = vsyncadd [#allocation3], 4294959104  ;;  %v55_v0 = vld [vmem:[#allocation2 + $0x100] sm:$0xff]  ;;  %v809_v1 = vld [vmem:[#allocation2 + $0x108] sm:$0xff]  ;;  %s783_s0 = smov [#allocation5]  }
  0x14   :  { %v811_v2 = vld [vmem:[#allocation2] sm:$0xff]  ;;  %v119_v3 = vmul.f32 %v55_v0, %v55_v0  ;;  %v120_v4 = vmul.f32 %v809_v1, %v809_v1  ;;  %v815_v5 = vld [vmem:[#allocation2 + $0x8] sm:$0xff]  ;;  %v57_v7 = vld [vmem:[#allocation2 + $0x110] sm:$0xff]  ;;  %s650_s20 = sshll.u32 %s783_s0, 4  ;;  %s651_s20 = int_to_ptr.vmem [resolvable:$true] %s650_s20 }
  0x15   :  { %1389 = vst [vmem:[#allocation8_spill] sm:$0xff] %v811_v2  ;;  %v87_v6 = vmul.f32 %v811_v2, %v811_v2  ;;  %v819_v8 = vld [vmem:[#allocation2 + $0x118] sm:$0xff]  ;;  %v88_v9 = vmul.f32 %v815_v5, %v815_v5  ;;  %v121_v10 = vmul.f32 %v57_v7, %v57_v7  ;;  %v825_v12 = vld [vmem:[#allocation2 + $0x10] sm:$0xff]  ;;  %v829_v14 = vld [vmem:[#allocation2 + $0x120] sm:$0xff]  ;;  %s754_s21 = scalar_lea.vmem %s651_s20, 8192  ;;  %p759_p9 = scmp.lt.s32.totalorder %s651_s20, %s651_s20 }
  0x16   :  { %v122_v11 = vmul.f32 %v819_v8, %v819_v8  ;;  %1390 = vst [vmem:[#allocation9_spill] sm:$0xff] %v825_v12  ;;  %v827_v13 = vld [vmem:[#allocation2 + $0x18] sm:$0xff]  ;;  %1391 = vst [vmem:[#allocation10_spill] sm:$0xff] %v829_v14  ;;  %v199_v15 = vadd.f32 %v120_v4, %v119_v3  ;;  %v89_v16 = vmul.f32 %v825_v12, %v825_v12  ;;  %v835_v18 = vld [vmem:[#allocation2 + $0x128] sm:$0xff]  ;;  %p755_p8 = scmp.ne.s32.totalorder %s651_s20, %s754_s21  ;;  %p760_p10 = scmp.lt.s32.totalorder %s754_s21, %s754_s21 }
  0x17   :  { %v90_v17 = vmul.f32 %v827_v13, %v827_v13  ;;  %v837_v19 = vld [vmem:[#allocation2 + $0x20] sm:$0xff]  ;;  %v839_v20 = vld [vmem:[#allocation2 + $0x28] sm:$0xff]  ;;  %v151_v21 = vadd.f32 %v88_v9, %v87_v6  ;;  %v123_v23 = vmul.f32 %v829_v14, %v829_v14  ;;  %v124_v24 = vmul.f32 %v835_v18, %v835_v18  ;;  %v849_v28 = vld [vmem:[#allocation2 + $0x130] sm:$0xff] }
  0x18   :  { %1392 = vst [vmem:[#allocation11_spill] sm:$0xff] %v837_v19  ;;  %200 = vadd.xlane.f32.xlu1 %v199_v15  ;;  %v202_v22 = vadd.f32 %v122_v11, %v121_v10  ;;  %v91_v26 = vmul.f32 %v837_v19, %v837_v19  ;;  %v92_v27 = vmul.f32 %v839_v20, %v839_v20  ;;  %1393 = vst [vmem:[#allocation12_spill] sm:$0xff] %v849_v28  ;;  %v851_v29 = vld [vmem:[#allocation2 + $0x138] sm:$0xff]  ;;  %v853_v30 = vld [vmem:[#allocation2 + $0x30] sm:$0xff]  ;;  %p761_p11 = por %p760_p10, %p759_p9 }
  0x19   :  { %152 = vadd.xlane.f32.xlu0 %v151_v21  ;;  %v154_v25 = vadd.f32 %v90_v17, %v89_v16  ;;  %1394 = vst [vmem:[#allocation13_spill] sm:$0xff] %v853_v30  ;;  %v855_v31 = vld [vmem:[#allocation2 + $0x38] sm:$0xff]  ;;  %v205_v32 = vadd.f32 %v124_v24, %v123_v23  ;;  %v125_v33 = vmul.f32 %v849_v28, %v849_v28  ;;  %v865_v38 = vld [vmem:[#allocation2 + $0x140] sm:$0xff]  ;;  %v867_v39 = vld [vmem:[#allocation2 + $0x148] sm:$0xff] }
  0x1a   :  { %v126_v34 = vmul.f32 %v851_v29, %v851_v29  ;;  %v157_v35 = vadd.f32 %v92_v27, %v91_v26  ;;  %v93_v36 = vmul.f32 %v853_v30, %v853_v30  ;;  %v94_v37 = vmul.f32 %v855_v31, %v855_v31  ;;  %1395 = vst [vmem:[#allocation14_spill] sm:$0xff] %v865_v38  ;;  %v869_v40 = vld [vmem:[#allocation2 + $0x40] sm:$0xff]  ;;  %v871_v41 = vld [vmem:[#allocation2 + $0x48] sm:$0xff]  ;;  %v881_v48 = vld [vmem:[#allocation2 + $0x150] sm:$0xff]  ;;  %p762_p12 = pnand %p761_p11, %p755_p8 }
  0x1b   :  { %1396 = vst [vmem:[#allocation15_spill] sm:$0xff] %v869_v40  ;;  %v127_v43 = vmul.f32 %v865_v38, %v865_v38  ;;  %v128_v44 = vmul.f32 %v867_v39, %v867_v39  ;;  %v95_v46 = vmul.f32 %v869_v40, %v869_v40  ;;  %v96_v47 = vmul.f32 %v871_v41, %v871_v41  ;;  %v883_v49 = vld [vmem:[#allocation2 + $0x158] sm:$0xff]  ;;  %v885_v50 = vld [vmem:[#allocation2 + $0x50] sm:$0xff]  ;;  %v897_v58 = vld [vmem:[#allocation2 + $0x160] sm:$0xff] }
  0x1c   :  { %203 = vadd.xlane.f32.xlu1 %v202_v22  ;;  %v208_v42 = vadd.f32 %v126_v34, %v125_v33  ;;  %v160_v45 = vadd.f32 %v94_v37, %v93_v36  ;;  %1397 = vst [vmem:[#allocation16_spill] sm:$0xff] %v881_v48  ;;  %1398 = vst [vmem:[#allocation17_spill] sm:$0xff] %v885_v50  ;;  %v887_v51 = vld [vmem:[#allocation2 + $0x58] sm:$0xff]  ;;  %v129_v53 = vmul.f32 %v881_v48, %v881_v48  ;;  %v899_v59 = vld [vmem:[#allocation2 + $0x168] sm:$0xff] }
  0x1d   :  { %155 = vadd.xlane.f32.xlu0 %v154_v25  ;;  %v211_v52 = vadd.f32 %v128_v44, %v127_v43  ;;  %v130_v54 = vmul.f32 %v883_v49, %v883_v49  ;;  %v163_v55 = vadd.f32 %v96_v47, %v95_v46  ;;  %v97_v56 = vmul.f32 %v885_v50, %v885_v50  ;;  %v901_v60 = vld [vmem:[#allocation2 + $0x60] sm:$0xff]  ;;  %v903_v61 = vld [vmem:[#allocation2 + $0x68] sm:$0xff]  ;;  %v913_v7 = vld [vmem:[#allocation2 + $0x170] sm:$0xff] }
  0x1e   :  { %v98_v57 = vmul.f32 %v887_v51, %v887_v51  ;;  %1399 = vst [vmem:[#allocation18_spill] sm:$0xff] %v897_v58  ;;  %1400 = vst [vmem:[#allocation19_spill] sm:$0xff] %v901_v60  ;;  %v131_v63 = vmul.f32 %v897_v58, %v897_v58  ;;  %v132_v0 = vmul.f32 %v899_v59, %v899_v59  ;;  %v915_v9 = vld [vmem:[#allocation2 + $0x178] sm:$0xff]  ;;  %v917_v10 = vld [vmem:[#allocation2 + $0x70] sm:$0xff] }
  0x1f   :  { %v214_v62 = vadd.f32 %v130_v54, %v129_v53  ;;  %v99_v4 = vmul.f32 %v901_v60, %v901_v60  ;;  %v100_v6 = vmul.f32 %v903_v61, %v903_v61  ;;  %1401 = vst [vmem:[#allocation20_spill] sm:$0xff] %v913_v7  ;;  %1402 = vst [vmem:[#allocation21_spill] sm:$0xff] %v915_v9  ;;  %v919_v11 = vld [vmem:[#allocation2 + $0x78] sm:$0xff]  ;;  %v929_v24 = vld [vmem:[#allocation2 + $0x180] sm:$0xff] }
  0x20   :  { %206 = vadd.xlane.f32.xlu1 %v205_v32  ;;  %v166_v3 = vadd.f32 %v98_v57, %v97_v56  ;;  %1403 = vst [vmem:[#allocation22_spill] sm:$0xff] %v917_v10  ;;  %v217_v15 = vadd.f32 %v132_v0, %v131_v63  ;;  %v133_v16 = vmul.f32 %v913_v7, %v913_v7  ;;  %1404 = vst [vmem:[#allocation23_spill] sm:$0xff] %v929_v24  ;;  %v931_v25 = vld [vmem:[#allocation2 + $0x188] sm:$0xff]  ;;  %v933_v26 = vld [vmem:[#allocation2 + $0x80] sm:$0xff] }
  0x21   :  { %158 = vadd.xlane.f32.xlu0 %v157_v35  ;;  %v134_v17 = vmul.f32 %v915_v9, %v915_v9  ;;  %v169_v21 = vadd.f32 %v100_v6, %v99_v4  ;;  %v101_v22 = vmul.f32 %v917_v10, %v917_v10  ;;  %v102_v23 = vmul.f32 %v919_v11, %v919_v11  ;;  %v935_v27 = vld [vmem:[#allocation2 + $0x88] sm:$0xff]  ;;  %v947_v43 = vld [vmem:[#allocation2 + $0x198] sm:$0xff]  ;;  %v949_v44 = vld [vmem:[#allocation2 + $0x90] sm:$0xff] }
  0x22   :  { %1405 = vst [vmem:[#allocation24_spill] sm:$0xff] %v931_v25  ;;  %1406 = vst [vmem:[#allocation25_spill] sm:$0xff] %v933_v26  ;;  %v135_v33 = vmul.f32 %v929_v24, %v929_v24  ;;  %v136_v34 = vmul.f32 %v931_v25, %v931_v25  ;;  %v103_v36 = vmul.f32 %v933_v26, %v933_v26  ;;  %v961_v56 = vld [vmem:[#allocation2 + $0x1a0] sm:$0xff]  ;;  %v963_v57 = vld [vmem:[#allocation2 + $0x1a8] sm:$0xff] }
  0x23   :  { %v220_v32 = vadd.f32 %v134_v17, %v133_v16  ;;  %v172_v35 = vadd.f32 %v102_v23, %v101_v22  ;;  %v104_v37 = vmul.f32 %v935_v27, %v935_v27  ;;  %1408 = vst [vmem:[#allocation27_spill] sm:$0xff] %v947_v43  ;;  %1409 = vst [vmem:[#allocation28_spill] sm:$0xff] %v949_v44  ;;  %v967_v63 = vld [vmem:[#allocation2 + $0xa8] sm:$0xff]  ;;  %v977_v17 = vld [vmem:[#allocation2 + $0x1b0] sm:$0xff] }
  0x24   :  { %209 = vadd.xlane.f32.xlu1 %v208_v42  ;;  %v945_v42 = vld [vmem:[#allocation2 + $0x190] sm:$0xff]  ;;  %v223_v46 = vadd.f32 %v136_v34, %v135_v33  ;;  %v105_v54 = vmul.f32 %v949_v44, %v949_v44  ;;  %1410 = vst [vmem:[#allocation29_spill] sm:$0xff] %v961_v56  ;;  %1411 = vst [vmem:[#allocation30_spill] sm:$0xff] %v963_v57  ;;  %v140_v4 = vmul.f32 %v963_v57, %v963_v57  ;;  %v983_v23 = vld [vmem:[#allocation2 + $0xb8] sm:$0xff] }
  0x25   :  { %161 = vadd.xlane.f32.xlu0 %v160_v45  ;;  %1407 = vst [vmem:[#allocation26_spill] sm:$0xff] %v945_v42  ;;  %v951_v45 = vld [vmem:[#allocation2 + $0x98] sm:$0xff]  ;;  %v137_v47 = vmul.f32 %v945_v42, %v945_v42  ;;  %v175_v53 = vadd.f32 %v104_v37, %v103_v36  ;;  %v108_v16 = vmul.f32 %v967_v63, %v967_v63  ;;  %1413 = vst [vmem:[#allocation32_spill] sm:$0xff] %v977_v17  ;;  %v981_v22 = vld [vmem:[#allocation2 + $0xb0] sm:$0xff] }
  0x26   :  { %1415 = vst [vmem:[#allocation34_spill] sm:$0xff] %v981_v22  ;;  %v141_v33 = vmul.f32 %v977_v17, %v977_v17  ;;  %v109_v36 = vmul.f32 %v981_v22, %v981_v22  ;;  %v110_v37 = vmul.f32 %v983_v23, %v983_v23  ;;  %v1027_v42 = vld [vmem:[#allocation2 + $0x1e8] sm:$0xff]  ;;  %v1041_v7 = vld [vmem:[#allocation2 + $0x1f0] sm:$0xff]  ;;  %v1043_v58 = vld [vmem:[#allocation2 + $0x1f8] sm:$0xff]  ;;  %v279_v22 = vlaneseq }
  0x27   :  { %1423 = vst [vmem:[#allocation42_spill] sm:$0xff] %v1027_v42  ;;  %1425 = vst [vmem:[#allocation44_spill] sm:$0xff] %v1041_v7 }
  0x28   :  { %212 = vadd.xlane.f32.xlu1 %v211_v52  ;;  %v138_v52 = vmul.f32 %v947_v43, %v947_v43  ;;  %1426 = vst [vmem:[#allocation45_spill] sm:$0xff] %v1043_v58 }
  0x29   :  { %164 = vadd.xlane.f32.xlu0 %v163_v55  ;;  %v106_v55 = vmul.f32 %v951_v45, %v951_v45 }
  0x2a   :  { %v226_v0 = vadd.f32 %v138_v52, %v137_v47  ;;  %v995_v47 = vld [vmem:[#allocation2 + $0x1c8] sm:$0xff]  ;;  %v997_v52 = vld [vmem:[#allocation2 + $0xc0] sm:$0xff] }
  0x2b   :  { %v178_v6 = vadd.f32 %v106_v55, %v105_v54  ;;  %1417 = vst [vmem:[#allocation36_spill] sm:$0xff] %v995_v47  ;;  %1418 = vst [vmem:[#allocation37_spill] sm:$0xff] %v997_v52 }
  0x2c   :  { %215 = vadd.xlane.f32.xlu1 %v214_v62  ;;  %v965_v62 = vld [vmem:[#allocation2 + $0xa0] sm:$0xff] }
  0x2d   :  { %167 = vadd.xlane.f32.xlu0 %v166_v3  ;;  %1412 = vst [vmem:[#allocation31_spill] sm:$0xff] %v965_v62  ;;  %v139_v3 = vmul.f32 %v961_v56, %v961_v56  ;;  %v1025_v56 = vld [vmem:[#allocation2 + $0x1e0] sm:$0xff] }
  0x2e   :  { %1422 = vst [vmem:[#allocation41_spill] sm:$0xff] %v1025_v56 }
  0x30   :  { %218 = vadd.xlane.f32.xlu1 %v217_v15  ;;  %v107_v15 = vmul.f32 %v965_v62, %v965_v62 }
  0x31   :  { %170 = vadd.xlane.f32.xlu0 %v169_v21  ;;  %v979_v21 = vld [vmem:[#allocation2 + $0x1b8] sm:$0xff] }
  0x32   :  { %1414 = vst [vmem:[#allocation33_spill] sm:$0xff] %v979_v21  ;;  %v142_v34 = vmul.f32 %v979_v21, %v979_v21 }
  0x34   :  { %221 = vadd.xlane.f32.xlu1 %v220_v32  ;;  %v229_v32 = vadd.f32 %v140_v4, %v139_v3  ;;  %v232_v54 = vadd.f32 %v142_v34, %v141_v33  ;;  %v184_v3 = vadd.f32 %v110_v37, %v109_v36  ;;  %v111_v4 = vmul.f32 %v997_v52, %v997_v52  ;;  %v1015_v33 = vld [vmem:[#allocation2 + $0xd8] sm:$0xff] }
  0x35   :  { %173 = vadd.xlane.f32.xlu0 %v172_v35  ;;  %v181_v35 = vadd.f32 %v108_v16, %v107_v15  ;;  %v1009_v15 = vld [vmem:[#allocation2 + $0x1d0] sm:$0xff]  ;;  %v1011_v16 = vld [vmem:[#allocation2 + $0x1d8] sm:$0xff]  ;;  %v114_v17 = vmul.f32 %v1015_v33, %v1015_v33 }
  0x36   :  { %1419 = vst [vmem:[#allocation38_spill] sm:$0xff] %v1009_v15  ;;  %1420 = vst [vmem:[#allocation39_spill] sm:$0xff] %v1011_v16  ;;  %v146_v36 = vmul.f32 %v1011_v16, %v1011_v16 }
  0x38   :  { %224 = vadd.xlane.f32.xlu1 %v223_v46  ;;  %v993_v46 = vld [vmem:[#allocation2 + $0x1c0] sm:$0xff] }
  0x39   :  { %176 = vadd.xlane.f32.xlu0 %v175_v53  ;;  %1416 = vst [vmem:[#allocation35_spill] sm:$0xff] %v993_v46  ;;  %v999_v53 = vld [vmem:[#allocation2 + $0xc8] sm:$0xff]  ;;  %v143_v55 = vmul.f32 %v993_v46, %v993_v46 }
  0x3c   :  { %227 = vadd.xlane.f32.xlu1 %v226_v0  ;;  %v144_v0 = vmul.f32 %v995_v47, %v995_v47 }
  0x3d   :  { %179 = vadd.xlane.f32.xlu0 %v178_v6  ;;  %v112_v6 = vmul.f32 %v999_v53, %v999_v53 }
  0x3e   :  { %v235_v34 = vadd.f32 %v144_v0, %v143_v55  ;;  %v1031_v55 = vld [vmem:[#allocation2 + $0xe8] sm:$0xff] }
  0x3f   :  { %v187_v37 = vadd.f32 %v112_v6, %v111_v4  ;;  %v148_v4 = vmul.f32 %v1027_v42, %v1027_v42  ;;  %v116_v24 = vmul.f32 %v1031_v55, %v1031_v55 }
  0x40   :  { %230 = vadd.xlane.f32.xlu1 %v229_v32  ;;  %v1013_v32 = vld [vmem:[#allocation2 + $0xd0] sm:$0xff] }
  0x41   :  { %182 = vadd.xlane.f32.xlu0 %v181_v35  ;;  %1421 = vst [vmem:[#allocation40_spill] sm:$0xff] %v1013_v32  ;;  %v145_v35 = vmul.f32 %v1009_v15, %v1009_v15  ;;  %v113_v46 = vmul.f32 %v1013_v32, %v1013_v32 }
  0x43   :  { %v238_v0 = vadd.f32 %v146_v36, %v145_v35  ;;  %v190_v6 = vadd.f32 %v114_v17, %v113_v46  ;;  %v1047_v35 = vld [vmem:[#allocation2 + $0xf8] sm:$0xff]  ;;  %v150_v17 = vmul.f32 %v1043_v58, %v1043_v58 }
  0x44   :  { %233 = vadd.xlane.f32.xlu1 %v232_v54  ;;  %v1029_v54 = vld [vmem:[#allocation2 + $0xe0] sm:$0xff]  ;;  %v118_v48 = vmul.f32 %v1047_v35, %v1047_v35 }
  0x45   :  { %185 = vadd.xlane.f32.xlu0 %v184_v3  ;;  %1424 = vst [vmem:[#allocation43_spill] sm:$0xff] %v1029_v54  ;;  %v147_v3 = vmul.f32 %v1025_v56, %v1025_v56  ;;  %v115_v15 = vmul.f32 %v1029_v54, %v1029_v54 }
  0x47   :  { %v241_v36 = vadd.f32 %v148_v4, %v147_v3  ;;  %v193_v46 = vadd.f32 %v116_v24, %v115_v15 }
  0x48   :  { %236 = vadd.xlane.f32.xlu1 %v235_v34  ;;  %v1045_v34 = vld [vmem:[#allocation2 + $0xf0] sm:$0xff] }
  0x49   :  { %188 = vadd.xlane.f32.xlu0 %v187_v37  ;;  %1427 = vst [vmem:[#allocation46_spill] sm:$0xff] %v1045_v34  ;;  %v149_v37 = vmul.f32 %v1041_v7, %v1041_v7  ;;  %v117_v56 = vmul.f32 %v1045_v34, %v1045_v34 }
  0x4b   :  { %v244_v38 = vadd.f32 %v150_v17, %v149_v37  ;;  %v196_v28 = vadd.f32 %v118_v48, %v117_v56  ;;  %v1057_v37 = vshrl.u32 %v279_v22, 7  ;;  %v1059_v48 = vand.u32 127, %v279_v22 }
  0x4c   :  { %239 = vadd.xlane.f32.xlu1 %v238_v0 }
  0x4d   :  { %191 = vadd.xlane.f32.xlu0 %v190_v6  ;;  %v1062_v56 = vadd.s32 128, %v1057_v37  ;;  %v1065_v17 = vadd.s32 128, %v1059_v48  ;;  %v281_v44 = vadd.s32 8, %v1057_v37  ;;  %vm315_vm1 = vcmp.eq.s32.totalorder %v1057_v37, %v1059_v48 }
  0x4e   :  { %v1088_v10 = vadd.s32 168, %v1057_v37  ;;  %v1095_v40 = vadd.s32 176, %v1057_v37  ;;  %v1152_v43 = vadd.s32 72, %v1057_v37 }
  0x4f   :  { %vm348_vm0 = vcmp.eq.s32.totalorder %v1062_v56, %v1065_v17  ;;  %vm317_vm3 = vcmp.eq.s32.totalorder %v281_v44, %v1059_v48 }
  0x50   :  { %242 = vadd.xlane.f32.xlu1 %v241_v36  ;;  %vm358_vm10 = vcmp.eq.s32.totalorder %v1088_v10, %v1065_v17  ;;  %vm360_vm12 = vcmp.eq.s32.totalorder %v1095_v40, %v1065_v17 }
  0x51   :  { %194 = vadd.xlane.f32.xlu0 %v193_v46  ;;  %v297_v46 = vadd.s32 136, %v1057_v37 }
  0x53   :  { %vm350_vm2 = vcmp.eq.s32.totalorder %v297_v46, %v1065_v17 }
  0x54   :  { %245 = vadd.xlane.f32.xlu1 %v244_v38 }
  0x55   :  { %197 = vadd.xlane.f32.xlu0 %v196_v28 }
  0xa5   :  { %v201_v0 = vpop.xlane.xlu1 %200 }
  0xa6   :  { %v153_v3 = vpop.xlane.xlu0 %152  ;;  %666 = vrsqrt.f32 %v201_v0 }
  0xa7   :  { %668 = vrsqrt.f32 %v153_v3  ;;  %v298_v3 = vadd.s32 144, %v1057_v37 }
  0xa9   :  { %v204_v4 = vpop.xlane.xlu1 %203  ;;  %vm352_vm4 = vcmp.eq.s32.totalorder %v298_v3, %v1065_v17 }
  0xaa   :  { %v156_v7 = vpop.xlane.xlu0 %155  ;;  %670 = vrsqrt.f32 %v204_v4  ;;  %v1082_v4 = vadd.s32 160, %v1057_v37 }
  0xab   :  { %672 = vrsqrt.f32 %v156_v7  ;;  %v282_v7 = vadd.s32 16, %v1057_v37 }
  0xac   :  { %vm356_vm8 = vcmp.eq.s32.totalorder %v1082_v4, %v1065_v17 }
  0xad   :  { %v207_v14 = vpop.xlane.xlu1 %206  ;;  %vm319_vm5 = vcmp.eq.s32.totalorder %v282_v7, %v1059_v48 }
  0xae   :  { %v159_v54 = vpop.xlane.xlu0 %158  ;;  %674 = vrsqrt.f32 %v207_v14  ;;  %v299_v14 = vadd.s32 152, %v1057_v37 }
  0xaf   :  { %676 = vrsqrt.f32 %v159_v54  ;;  %v1079_v54 = vadd.s32 24, %v1057_v37 }
  0xb0   :  { %v667_v26 = vpop.eup %666  ;;  %vm354_vm6 = vcmp.eq.s32.totalorder %v299_v14, %v1065_v17 }
  0xb1   :  { %v210_v6 = vpop.xlane.xlu1 %209  ;;  %v669_v50 = vpop.eup %668  ;;  %vm321_vm7 = vcmp.eq.s32.totalorder %v1079_v54, %v1059_v48  ;;  %v412_v47 = vsel %vm348_vm0, %v667_v26, 0.0 }
  0xb2   :  { %v162_v24 = vpop.xlane.xlu0 %161  ;;  %678 = vrsqrt.f32 %v210_v6  ;;  %v379_v21 = vsel %vm315_vm1, %v669_v50, 0.0 }
  0xb3   :  { %680 = vrsqrt.f32 %v162_v24  ;;  %v1085_v24 = vadd.s32 32, %v1057_v37 }
  0xb4   :  { %v671_v30 = vpop.eup %670 }
  0xb5   :  { %v213_v15 = vpop.xlane.xlu1 %212  ;;  %v673_v19 = vpop.eup %672  ;;  %vm323_vm9 = vcmp.eq.s32.totalorder %v1085_v24, %v1059_v48  ;;  %v306_v24 = vadd.s32 208, %v1057_v37 }
  0xb6   :  { %v165_v32 = vpop.xlane.xlu0 %164  ;;  %682 = vrsqrt.f32 %v213_v15  ;;  %v1091_v15 = vadd.s32 40, %v1057_v37  ;;  %v381_v16 = vsel %vm317_vm3, %v673_v19, 0.0  ;;  %v1142_v19 = vadd.s32 200, %v1057_v37 }
  0xb7   :  { %684 = vrsqrt.f32 %v165_v32  ;;  %v1098_v32 = vadd.s32 48, %v1057_v37  ;;  %v443_v3 = vadd.f32 %v381_v16, %v379_v21  ;;  %vm333_vm3 = vcmp.eq.s32.totalorder %v1152_v43, %v1059_v48 }
  0xb8   :  { %v675_v2 = vpop.eup %674  ;;  %vm325_vm11 = vcmp.eq.s32.totalorder %v1091_v15, %v1059_v48 }
  0xb9   :  { %v216_v34 = vpop.xlane.xlu1 %215  ;;  %v677_v58 = vpop.eup %676  ;;  %vm327_vm13 = vcmp.eq.s32.totalorder %v1098_v32, %v1059_v48 }
  0xba   :  { %v168_v52 = vpop.xlane.xlu0 %167  ;;  %686 = vrsqrt.f32 %v216_v34  ;;  %v1103_v34 = vadd.s32 184, %v1057_v37  ;;  %v383_v26 = vsel %vm319_vm5, %v677_v58, 0.0 }
  0xbb   :  { %688 = vrsqrt.f32 %v168_v52  ;;  %v1110_v52 = vadd.s32 56, %v1057_v37 }
  0xbc   :  { %v679_v42 = vpop.eup %678  ;;  %vm362_vm14 = vcmp.eq.s32.totalorder %v1103_v34, %v1065_v17 }
  0xbd   :  { %v219_v62 = vpop.xlane.xlu1 %218  ;;  %v681_v46 = vpop.eup %680  ;;  %vm329_vm15 = vcmp.eq.s32.totalorder %v1110_v52, %v1059_v48 }
  0xbe   :  { %v171_v36 = vpop.xlane.xlu0 %170  ;;  %690 = vrsqrt.f32 %v219_v62  ;;  %v385_v50 = vsel %vm321_vm7, %v681_v46, 0.0 }
  0xbf   :  { %692 = vrsqrt.f32 %v171_v36  ;;  %v414_v36 = vsel %vm350_vm2, %v671_v30, 0.0  ;;  %v1132_v30 = vadd.s32 64, %v1057_v37  ;;  %vm366_vm2 = vcmp.eq.s32.totalorder %v1142_v19, %v1065_v17 }
  0xc0   :  { %v496_v57 = vadd.f32 %v414_v36, %v412_v47  ;;  %v444_v47 = vadd.f32 %v443_v3, %v383_v26  ;;  %v291_v3 = vadd.s32 88, %v1057_v37  ;;  %v293_v19 = vadd.s32 104, %v1057_v37 }
  0xc1   :  { %v222_v28 = vpop.xlane.xlu1 %221  ;;  %vm331_vm1 = vcmp.eq.s32.totalorder %v1132_v30, %v1059_v48 }
  0xc2   :  { %v174_v38 = vpop.xlane.xlu0 %173  ;;  %694 = vrsqrt.f32 %v222_v28  ;;  %v1129_v28 = vadd.s32 192, %v1057_v37  ;;  %v445_v14 = vadd.f32 %v444_v47, %v385_v50  ;;  %vm337_vm7 = vcmp.eq.s32.totalorder %v291_v3, %v1059_v48 }
  0xc3   :  { %696 = vrsqrt.f32 %v174_v38  ;;  %v416_v38 = vsel %vm352_vm4, %v675_v2, 0.0  ;;  %vm368_vm4 = vcmp.eq.s32.totalorder %v306_v24, %v1065_v17 }
  0xc4   :  { %v497_v9 = vadd.f32 %v496_v57, %v416_v38  ;;  %vm364_vm0 = vcmp.eq.s32.totalorder %v1129_v28, %v1065_v17 }
  0xc5   :  { %v225_v22 = vpop.xlane.xlu1 %224 }
  0xc6   :  { %v177_v0 = vpop.xlane.xlu0 %176  ;;  %698 = vrsqrt.f32 %v225_v22  ;;  %v683_v22 = vpop.eup %682 }
  0xc7   :  { %700 = vrsqrt.f32 %v177_v0  ;;  %v685_v2 = vpop.eup %684  ;;  %v418_v0 = vsel %vm354_vm6, %v679_v42, 0.0  ;;  %v420_v42 = vsel %vm356_vm8, %v683_v22, 0.0  ;;  %v307_v22 = vadd.s32 216, %v1057_v37 }
  0xc8   :  { %v687_v25 = vpop.eup %686  ;;  %v498_v21 = vadd.f32 %v497_v9, %v418_v0  ;;  %v387_v16 = vsel %vm323_vm9, %v685_v2, 0.0 }
  0xc9   :  { %v228_v6 = vpop.xlane.xlu1 %227  ;;  %v689_v58 = vpop.eup %688  ;;  %v422_v54 = vsel %vm358_vm10, %v687_v25, 0.0  ;;  %v446_v36 = vadd.f32 %v445_v14, %v387_v16  ;;  %v290_v25 = vadd.s32 80, %v1057_v37  ;;  %vm370_vm6 = vcmp.eq.s32.totalorder %v307_v22, %v1065_v17 }
  0xca   :  { %v180_v60 = vpop.xlane.xlu0 %179  ;;  %702 = vrsqrt.f32 %v228_v6  ;;  %v691_v57 = vpop.eup %690  ;;  %v499_v4 = vadd.f32 %v498_v21, %v420_v42  ;;  %v389_v6 = vsel %vm325_vm11, %v689_v58, 0.0  ;;  %v308_v58 = vadd.s32 224, %v1057_v37 }
  0xcb   :  { %704 = vrsqrt.f32 %v180_v60  ;;  %v693_v7 = vpop.eup %692  ;;  %v424_v10 = vsel %vm360_vm12, %v691_v57, 0.0  ;;  %v447_v2 = vadd.f32 %v446_v36, %v389_v6  ;;  %vm335_vm5 = vcmp.eq.s32.totalorder %v290_v25, %v1059_v48 }
  0xcc   :  { %v695_v9 = vpop.eup %694  ;;  %v391_v15 = vsel %vm327_vm13, %v693_v7, 0.0  ;;  %vm372_vm8 = vcmp.eq.s32.totalorder %v308_v58, %v1065_v17  ;;  %vm341_vm11 = vcmp.eq.s32.totalorder %v293_v19, %v1059_v48 }
  0xcd   :  { %v231_v12 = vpop.xlane.xlu1 %230  ;;  %v426_v40 = vsel %vm362_vm14, %v695_v9, 0.0  ;;  %v448_v42 = vadd.f32 %v447_v2, %v391_v15  ;;  %v294_v2 = vadd.s32 112, %v1057_v37 }
  0xce   :  { %v183_v62 = vpop.xlane.xlu0 %182  ;;  %706 = vrsqrt.f32 %v231_v12 }
  0xcf   :  { %708 = vrsqrt.f32 %v183_v62  ;;  %v697_v62 = vpop.eup %696  ;;  %vm343_vm13 = vcmp.eq.s32.totalorder %v294_v2, %v1059_v48 }
  0xd0   :  { %v699_v38 = vpop.eup %698  ;;  %v393_v32 = vsel %vm329_vm15, %v697_v62, 0.0 }
  0xd1   :  { %v234_v44 = vpop.xlane.xlu1 %233  ;;  %v428_v34 = vsel %vm364_vm0, %v699_v38, 0.0  ;;  %v449_v14 = vadd.f32 %v448_v42, %v393_v32 }
  0xd2   :  { %v186_v56 = vpop.xlane.xlu0 %185  ;;  %710 = vrsqrt.f32 %v234_v44  ;;  %v500_v44 = vadd.f32 %v499_v4, %v422_v54  ;;  %v309_v4 = vadd.s32 232, %v1057_v37 }
  0xd3   :  { %712 = vrsqrt.f32 %v186_v56  ;;  %v701_v56 = vpop.eup %700 }
  0xd4   :  { %v703_v0 = vpop.eup %702  ;;  %v501_v50 = vadd.f32 %v500_v44, %v424_v10  ;;  %v395_v52 = vsel %vm331_vm1, %v701_v56, 0.0  ;;  %v310_v44 = vadd.s32 240, %v1057_v37  ;;  %vm374_vm10 = vcmp.eq.s32.totalorder %v309_v4, %v1065_v17 }
  0xd5   :  { %v237_v60 = vpop.xlane.xlu1 %236  ;;  %v705_v47 = vpop.eup %704  ;;  %v430_v28 = vsel %vm366_vm2, %v703_v0, 0.0  ;;  %v450_v62 = vadd.f32 %v449_v14, %v395_v52 }
  0xd6   :  { %v189_v12 = vpop.xlane.xlu0 %188  ;;  %714 = vrsqrt.f32 %v237_v60  ;;  %v292_v60 = vadd.s32 96, %v1057_v37  ;;  %v502_v16 = vadd.f32 %v501_v50, %v426_v40  ;;  %v397_v30 = vsel %vm333_vm3, %v705_v47, 0.0 }
  0xd7   :  { %716 = vrsqrt.f32 %v189_v12  ;;  %v451_v56 = vadd.f32 %v450_v62, %v397_v30  ;;  %vm376_vm12 = vcmp.eq.s32.totalorder %v310_v44, %v1065_v17 }
  0xd8   :  { %v707_v21 = vpop.eup %706  ;;  %v503_v9 = vadd.f32 %v502_v16, %v428_v34  ;;  %vm339_vm9 = vcmp.eq.s32.totalorder %v292_v60, %v1059_v48  ;;  %v311_v34 = vadd.s32 248, %v1057_v37 }
  0xd9   :  { %v240_v46 = vpop.xlane.xlu1 %239  ;;  %v709_v7 = vpop.eup %708  ;;  %v432_v36 = vsel %vm368_vm4, %v707_v21, 0.0  ;;  %v295_v21 = vadd.s32 120, %v1057_v37 }
  0xda   :  { %718 = vrsqrt.f32 %v240_v46  ;;  %v192_v26 = vpop.xlane.xlu0 %191  ;;  %v504_v38 = vadd.f32 %v503_v9, %v430_v28  ;;  %v399_v43 = vsel %vm335_vm5, %v709_v7, 0.0  ;;  %vm378_vm14 = vcmp.eq.s32.totalorder %v311_v34, %v1065_v17 }
  0xdb   :  { %720 = vrsqrt.f32 %v192_v26  ;;  %v452_v32 = vadd.f32 %v451_v56, %v399_v43  ;;  %vm345_vm15 = vcmp.eq.s32.totalorder %v295_v21, %v1059_v48  ;;  %v1432_v21 = vld [vmem:[#allocation33_spill] sm:$0xff] }
  0xdc   :  { %v711_v54 = vpop.eup %710  ;;  %v505_v0 = vadd.f32 %v504_v38, %v432_v36 }
  0xdd   :  { %v243_v57 = vpop.xlane.xlu1 %242  ;;  %v713_v6 = vpop.eup %712  ;;  %v434_v24 = vsel %vm370_vm6, %v711_v54, 0.0 }
  0xde   :  { %722 = vrsqrt.f32 %v243_v57  ;;  %v195_v12 = vpop.xlane.xlu0 %194  ;;  %v401_v50 = vsel %vm337_vm7, %v713_v6, 0.0  ;;  %v506_v42 = vadd.f32 %v505_v0, %v434_v24 }
  0xdf   :  { %724 = vrsqrt.f32 %v195_v12  ;;  %v453_v57 = vadd.f32 %v452_v32, %v401_v50 }
  0xe0   :  { %v715_v46 = vpop.eup %714 }
  0xe1   :  { %v246_v10 = vpop.xlane.xlu1 %245  ;;  %v717_v26 = vpop.eup %716  ;;  %v436_v47 = vsel %vm372_vm8, %v715_v46, 0.0 }
  0xe2   :  { %726 = vrsqrt.f32 %v246_v10  ;;  %v198_v15 = vpop.xlane.xlu0 %197  ;;  %v403_v22 = vsel %vm339_vm9, %v717_v26, 0.0  ;;  %v507_v52 = vadd.f32 %v506_v42, %v436_v47 }
  0xe3   :  { %728 = vrsqrt.f32 %v198_v15  ;;  %v454_v7 = vadd.f32 %v453_v57, %v403_v22 }
  0xe4   :  { %v719_v40 = vpop.eup %718 }
  0xe5   :  { %v721_v25 = vpop.eup %720  ;;  %v438_v3 = vsel %vm374_vm10, %v719_v40, 0.0 }
  0xe6   :  { %v405_v58 = vsel %vm341_vm11, %v721_v25, 0.0  ;;  %v508_v28 = vadd.f32 %v507_v52, %v438_v3 }
  0xe7   :  { %v455_v60 = vadd.f32 %v454_v7, %v405_v58  ;;  %v1435_v58 = vld [vmem:[#allocation42_spill] sm:$0xff]  ;;  %v1436_v7 = vld [vmem:[#allocation45_spill] sm:$0xff] }
  0xe8   :  { %v723_v16 = vpop.eup %722 }
  0xe9   :  { %v725_v12 = vpop.eup %724  ;;  %v440_v14 = vsel %vm376_vm12, %v723_v16, 0.0 }
  0xea   :  { %v407_v54 = vsel %vm343_vm13, %v725_v12, 0.0  ;;  %v509_v30 = vadd.f32 %v508_v28, %v440_v14  ;;  %v1437_v28 = vld [vmem:[#allocation8_spill] sm:$0xff] }
  0xeb   :  { %v456_v6 = vadd.f32 %v455_v60, %v407_v54  ;;  %v1438_v60 = vld [vmem:[#allocation9_spill] sm:$0xff] }
  0xec   :  { %v727_v9 = vpop.eup %726 }
  0xed   :  { %v729_v4 = vpop.eup %728  ;;  %v442_v62 = vsel %vm378_vm14, %v727_v9, 0.0 }
  0xee   :  { %v510_v36 = vadd.f32 %v509_v30, %v442_v62  ;;  %v409_v37 = vsel %vm345_vm15, %v729_v4, 0.0  ;;  %v1439_v30 = vld [vmem:[#allocation11_spill] sm:$0xff] }
  0xef   :  { %v457_v19 = vadd.f32 %v456_v6, %v409_v37  ;;  %v1440_v6 = vld [vmem:[#allocation13_spill] sm:$0xff] }
  0xf0   :  { %v511_v10 = vrot.slane %v510_v36, 4 }
  0xf1   :  { %v474_v46 = vrot.slane %v457_v19, 4 }
  0xf2   :  { %v512_v38 = vadd.f32 %v511_v10, %v510_v36  ;;  %v1441_v36 = vld [vmem:[#allocation15_spill] sm:$0xff] }
  0xf3   :  { %v475_v43 = vadd.f32 %v474_v46, %v457_v19  ;;  %v1442_v19 = vld [vmem:[#allocation17_spill] sm:$0xff]  ;;  %v1443_v46 = vld [vmem:[#allocation19_spill] sm:$0xff] }
  0xf4   :  { %v513_v44 = vrot.slane %v512_v38, 2 }
  0xf5   :  { %v476_v15 = vrot.slane %v475_v43, 2 }
  0xf6   :  { %v514_v26 = vadd.f32 %v513_v44, %v512_v38 }
  0xf7   :  { %v477_v56 = vadd.f32 %v476_v15, %v475_v43  ;;  %v1444_v43 = vld [vmem:[#allocation22_spill] sm:$0xff]  ;;  %v1445_v15 = vld [vmem:[#allocation25_spill] sm:$0xff] }
  0xf8   :  { %v515_v17 = vrot.slane %v514_v26, 1 }
  0xf9   :  { %v478_v24 = vrot.slane %v477_v56, 1 }
  0xfa   :  { %v516_v2 = vadd.f32 %v515_v17, %v514_v26 }
  0xfb   :  { %v1237_v48 = vadd.f32 %v478_v24, %v477_v56  ;;  %v1446_v56 = vld [vmem:[#allocation28_spill] sm:$0xff]  ;;  %v1447_v24 = vld [vmem:[#allocation31_spill] sm:$0xff] }
  0xfc   :  { %v518_v40 = vmul.f32 %v516_v2, %v815_v5  ;;  %v520_v0 = vmul.f32 %v516_v2, %v827_v13  ;;  %v522_v50 = vmul.f32 %v516_v2, %v839_v20  ;;  %v524_v25 = vmul.f32 %v516_v2, %v855_v31 }
  0xfd   :  { %v526_v32 = vmul.f32 %v516_v2, %v871_v41  ;;  %v528_v47 = vmul.f32 %v516_v2, %v887_v51  ;;  %v530_v42 = vmul.f32 %v516_v2, %v903_v61  ;;  %v532_v22 = vmul.f32 %v516_v2, %v919_v11 }
  0xfe   :  { %v534_v34 = vmul.f32 %v516_v2, %v935_v27  ;;  %v536_v57 = vmul.f32 %v516_v2, %v951_v45  ;;  %v538_v5 = vmul.f32 %v516_v2, %v967_v63  ;;  %v540_v13 = vmul.f32 %v516_v2, %v983_v23  ;;  %582 = vst [vmem:[#allocation5 + $0x8] sm:$0xff] %v518_v40  ;;  %v1448_v40 = vld [vmem:[#allocation34_spill] sm:$0xff] }
  0xff   :  { %584 = vst [vmem:[#allocation5 + $0x18] sm:$0xff] %v520_v0  ;;  %586 = vst [vmem:[#allocation5 + $0x28] sm:$0xff] %v522_v50  ;;  %v542_v20 = vmul.f32 %v516_v2, %v999_v53  ;;  %v544_v31 = vmul.f32 %v516_v2, %v1015_v33  ;;  %v546_v41 = vmul.f32 %v516_v2, %v1031_v55  ;;  %v1428_v33 = vld [vmem:[#allocation21_spill] sm:$0xff] }
 0x100   :  { %588 = vst [vmem:[#allocation5 + $0x38] sm:$0xff] %v524_v25  ;;  %v548_v51 = vmul.f32 %v516_v2, %v1047_v35  ;;  %590 = vst [vmem:[#allocation5 + $0x48] sm:$0xff] %v526_v32  ;;  %v550_v61 = vmul.f32 %v516_v2, %v809_v1  ;;  %v552_v11 = vmul.f32 %v516_v2, %v819_v8  ;;  %v1429_v1 = vld [vmem:[#allocation24_spill] sm:$0xff]  ;;  %v1431_v35 = vld [vmem:[#allocation30_spill] sm:$0xff] }
 0x101   :  { %592 = vst [vmem:[#allocation5 + $0x58] sm:$0xff] %v528_v47  ;;  %594 = vst [vmem:[#allocation5 + $0x68] sm:$0xff] %v530_v42  ;;  %v554_v27 = vmul.f32 %v516_v2, %v835_v18  ;;  %v556_v45 = vmul.f32 %v516_v2, %v851_v29  ;;  %v558_v63 = vmul.f32 %v516_v2, %v867_v39  ;;  %v1430_v18 = vld [vmem:[#allocation27_spill] sm:$0xff]  ;;  %v1433_v39 = vld [vmem:[#allocation36_spill] sm:$0xff] }
 0x102   :  { %596 = vst [vmem:[#allocation5 + $0x78] sm:$0xff] %v532_v22  ;;  %598 = vst [vmem:[#allocation5 + $0x88] sm:$0xff] %v534_v34  ;;  %v560_v23 = vmul.f32 %v516_v2, %v883_v49  ;;  %v562_v53 = vmul.f32 %v516_v2, %v899_v59  ;;  %v564_v55 = vmul.f32 %v516_v2, %v1428_v33  ;;  %v1434_v59 = vld [vmem:[#allocation39_spill] sm:$0xff]  ;;  %v1449_v50 = vld [vmem:[#allocation37_spill] sm:$0xff] }
 0x103   :  { %600 = vst [vmem:[#allocation5 + $0x98] sm:$0xff] %v536_v57  ;;  %602 = vst [vmem:[#allocation5 + $0xa8] sm:$0xff] %v538_v5  ;;  %v566_v8 = vmul.f32 %v516_v2, %v1429_v1  ;;  %v568_v29 = vmul.f32 %v516_v2, %v1430_v18  ;;  %v570_v3 = vmul.f32 %v516_v2, %v1431_v35  ;;  %v1450_v32 = vld [vmem:[#allocation40_spill] sm:$0xff]  ;;  %v1451_v42 = vld [vmem:[#allocation43_spill] sm:$0xff] }
 0x104   :  { %604 = vst [vmem:[#allocation5 + $0xb8] sm:$0xff] %v540_v13  ;;  %606 = vst [vmem:[#allocation5 + $0xc8] sm:$0xff] %v542_v20  ;;  %v572_v16 = vmul.f32 %v516_v2, %v1432_v21  ;;  %v574_v49 = vmul.f32 %v516_v2, %v1433_v39  ;;  %v576_v52 = vmul.f32 %v516_v2, %v1434_v59  ;;  %v1452_v34 = vld [vmem:[#allocation46_spill] sm:$0xff]  ;;  %v730_v5 = vld [vmem:[#allocation2 + $0x100] sm:$0xff] }
 0x105   :  { %608 = vst [vmem:[#allocation5 + $0xd8] sm:$0xff] %v544_v31  ;;  %610 = vst [vmem:[#allocation5 + $0xe8] sm:$0xff] %v546_v41  ;;  %v578_v12 = vmul.f32 %v516_v2, %v1435_v58  ;;  %v580_v14 = vmul.f32 %v516_v2, %v1436_v7  ;;  %v517_v54 = vmul.f32 %v1237_v48, %v1437_v28  ;;  %v731_v20 = vld [vmem:[#allocation2 + $0x110] sm:$0xff] }
 0x106   :  { %612 = vst [vmem:[#allocation5 + $0xf8] sm:$0xff] %v548_v51  ;;  %614 = vst [vmem:[#allocation5 + $0x108] sm:$0xff] %v550_v61  ;;  %v519_v9 = vmul.f32 %v1237_v48, %v1438_v60  ;;  %v521_v4 = vmul.f32 %v1237_v48, %v1439_v30  ;;  %v523_v62 = vmul.f32 %v1237_v48, %v1440_v6  ;;  %v1453_v41 = vld [vmem:[#allocation10_spill] sm:$0xff]  ;;  %v1454_v61 = vld [vmem:[#allocation12_spill] sm:$0xff] }
 0x107   :  { %616 = vst [vmem:[#allocation5 + $0x118] sm:$0xff] %v552_v11  ;;  %618 = vst [vmem:[#allocation5 + $0x128] sm:$0xff] %v554_v27  ;;  %v525_v37 = vmul.f32 %v1237_v48, %v1441_v36  ;;  %v527_v10 = vmul.f32 %v1237_v48, %v1442_v19  ;;  %v529_v38 = vmul.f32 %v1237_v48, %v1443_v46  ;;  %v1455_v27 = vld [vmem:[#allocation14_spill] sm:$0xff] }
 0x108   :  { %620 = vst [vmem:[#allocation5 + $0x138] sm:$0xff] %v556_v45  ;;  %622 = vst [vmem:[#allocation5 + $0x148] sm:$0xff] %v558_v63  ;;  %v531_v44 = vmul.f32 %v1237_v48, %v1444_v43  ;;  %v533_v26 = vmul.f32 %v1237_v48, %v1445_v15  ;;  %v535_v17 = vmul.f32 %v1237_v48, %v1446_v56  ;;  %v1456_v63 = vld [vmem:[#allocation16_spill] sm:$0xff] }
 0x109   :  { %624 = vst [vmem:[#allocation5 + $0x158] sm:$0xff] %v560_v23  ;;  %626 = vst [vmem:[#allocation5 + $0x168] sm:$0xff] %v562_v53  ;;  %v537_v2 = vmul.f32 %v1237_v48, %v1447_v24  ;;  %v539_v0 = vmul.f32 %v1237_v48, %v1448_v40  ;;  %v541_v25 = vmul.f32 %v1237_v48, %v1449_v50  ;;  %v1457_v53 = vld [vmem:[#allocation18_spill] sm:$0xff] }
 0x10a   :  { %628 = vst [vmem:[#allocation5 + $0x178] sm:$0xff] %v564_v55  ;;  %630 = vst [vmem:[#allocation5 + $0x188] sm:$0xff] %v566_v8  ;;  %v543_v47 = vmul.f32 %v1237_v48, %v1450_v32  ;;  %v545_v22 = vmul.f32 %v1237_v48, %v1451_v42  ;;  %v547_v57 = vmul.f32 %v1237_v48, %v1452_v34  ;;  %v1458_v55 = vld [vmem:[#allocation20_spill] sm:$0xff]  ;;  %v1459_v8 = vld [vmem:[#allocation23_spill] sm:$0xff] }
 0x10b   :  { %632 = vst [vmem:[#allocation5 + $0x198] sm:$0xff] %v568_v29  ;;  %634 = vst [vmem:[#allocation5 + $0x1a8] sm:$0xff] %v570_v3  ;;  %v549_v13 = vmul.f32 %v730_v5, %v1237_v48  ;;  %v551_v31 = vmul.f32 %v731_v20, %v1237_v48  ;;  %v553_v51 = vmul.f32 %v1237_v48, %v1453_v41  ;;  %v1460_v29 = vld [vmem:[#allocation26_spill] sm:$0xff]  ;;  %v1461_v3 = vld [vmem:[#allocation29_spill] sm:$0xff] }
 0x10c   :  { %636 = vst [vmem:[#allocation5 + $0x1b8] sm:$0xff] %v572_v16  ;;  %638 = vst [vmem:[#allocation5 + $0x1c8] sm:$0xff] %v574_v49  ;;  %v555_v11 = vmul.f32 %v1237_v48, %v1454_v61  ;;  %v557_v45 = vmul.f32 %v1237_v48, %v1455_v27  ;;  %v559_v23 = vmul.f32 %v1237_v48, %v1456_v63  ;;  %v1462_v16 = vld [vmem:[#allocation32_spill] sm:$0xff]  ;;  %v1463_v49 = vld [vmem:[#allocation35_spill] sm:$0xff] }
 0x10d   :  { %640 = vst [vmem:[#allocation5 + $0x1d8] sm:$0xff] %v576_v52  ;;  %642 = vst [vmem:[#allocation5 + $0x1e8] sm:$0xff] %v578_v12  ;;  %v561_v33 = vmul.f32 %v1237_v48, %v1457_v53  ;;  %v563_v1 = vmul.f32 %v1237_v48, %v1458_v55  ;;  %v565_v18 = vmul.f32 %v1237_v48, %v1459_v8  ;;  %v1464_v52 = vld [vmem:[#allocation38_spill] sm:$0xff]  ;;  %v1465_v12 = vld [vmem:[#allocation41_spill] sm:$0xff] }
 0x10e   :  { %644 = vst [vmem:[#allocation5 + $0x1f8] sm:$0xff] %v580_v14  ;;  %581 = vst [vmem:[#allocation5] sm:$0xff] %v517_v54  ;;  %v567_v35 = vmul.f32 %v1237_v48, %v1460_v29  ;;  %v569_v21 = vmul.f32 %v1237_v48, %v1461_v3  ;;  %v571_v39 = vmul.f32 %v1237_v48, %v1462_v16  ;;  %v1466_v14 = vld [vmem:[#allocation44_spill] sm:$0xff] }
 0x10f   :  { %583 = vst [vmem:[#allocation5 + $0x10] sm:$0xff] %v519_v9  ;;  %585 = vst [vmem:[#allocation5 + $0x20] sm:$0xff] %v521_v4  ;;  %v573_v59 = vmul.f32 %v1237_v48, %v1463_v49  ;;  %v575_v58 = vmul.f32 %v1237_v48, %v1464_v52  ;;  %v577_v7 = vmul.f32 %v1237_v48, %v1465_v12 }
 0x110   :  { %587 = vst [vmem:[#allocation5 + $0x30] sm:$0xff] %v523_v62  ;;  %589 = vst [vmem:[#allocation5 + $0x40] sm:$0xff] %v525_v37  ;;  %v579_v28 = vmul.f32 %v1237_v48, %v1466_v14 }
 0x111   :  { %591 = vst [vmem:[#allocation5 + $0x50] sm:$0xff] %v527_v10  ;;  %593 = vst [vmem:[#allocation5 + $0x60] sm:$0xff] %v529_v38 }
 0x112   :  { %595 = vst [vmem:[#allocation5 + $0x70] sm:$0xff] %v531_v44  ;;  %597 = vst [vmem:[#allocation5 + $0x80] sm:$0xff] %v533_v26 }
 0x113   :  { %599 = vst [vmem:[#allocation5 + $0x90] sm:$0xff] %v535_v17  ;;  %601 = vst [vmem:[#allocation5 + $0xa0] sm:$0xff] %v537_v2 }
 0x114   :  { %603 = vst [vmem:[#allocation5 + $0xb0] sm:$0xff] %v539_v0  ;;  %605 = vst [vmem:[#allocation5 + $0xc0] sm:$0xff] %v541_v25 }
 0x115   :  { %607 = vst [vmem:[#allocation5 + $0xd0] sm:$0xff] %v543_v47  ;;  %609 = vst [vmem:[#allocation5 + $0xe0] sm:$0xff] %v545_v22 }
 0x116   :  { %611 = vst [vmem:[#allocation5 + $0xf0] sm:$0xff] %v547_v57  ;;  %613 = vst [vmem:[#allocation5 + $0x100] sm:$0xff] %v549_v13 }
 0x117   :  { %615 = vst [vmem:[#allocation5 + $0x110] sm:$0xff] %v551_v31  ;;  %617 = vst [vmem:[#allocation5 + $0x120] sm:$0xff] %v553_v51 }
 0x118   :  { %619 = vst [vmem:[#allocation5 + $0x130] sm:$0xff] %v555_v11  ;;  %621 = vst [vmem:[#allocation5 + $0x140] sm:$0xff] %v557_v45 }
 0x119   :  { %623 = vst [vmem:[#allocation5 + $0x150] sm:$0xff] %v559_v23  ;;  %625 = vst [vmem:[#allocation5 + $0x160] sm:$0xff] %v561_v33 }
 0x11a   :  { %627 = vst [vmem:[#allocation5 + $0x170] sm:$0xff] %v563_v1  ;;  %629 = vst [vmem:[#allocation5 + $0x180] sm:$0xff] %v565_v18 }
 0x11b   :  { %631 = vst [vmem:[#allocation5 + $0x190] sm:$0xff] %v567_v35  ;;  %633 = vst [vmem:[#allocation5 + $0x1a0] sm:$0xff] %v569_v21 }
 0x11c   :  { %635 = vst [vmem:[#allocation5 + $0x1b0] sm:$0xff] %v571_v39  ;;  %637 = vst [vmem:[#allocation5 + $0x1c0] sm:$0xff] %v573_v59 }
 0x11d   :  { %639 = vst [vmem:[#allocation5 + $0x1d0] sm:$0xff] %v575_v58  ;;  %641 = vst [vmem:[#allocation5 + $0x1e0] sm:$0xff] %v577_v7 }
 0x11e   :  { %643 = vst [vmem:[#allocation5 + $0x1f0] sm:$0xff] %v579_v28 }
 0x11f   :  { %765 = shalt.err (!%p762_p12)
}
 0x120   :  { %s766_s24 = scalar_lea.hbm %s1349_s1, 8192 }
 0x121   :  { %p767_p13 = scmp.ne.s32.totalorder %s1349_s1, %s766_s24  ;;  %p770_p0 = scmp.lt.u32.totalorder %s766_s24, %s1349_s1 }
 0x123   :  { %p772_p1 = pnand %p770_p0, %p767_p13 }
 0x125   :  { %775 = shalt.err (!%p772_p1)
}
 0x126   :  { %656 = dma.vmem_to_hbm [thread:$0]  %s651_s20, 8192, %s1349_s1, [#allocation4], %s781_s16, %s781_s16, %s782_s17  }
 0x127   :  { %778 = dma.done.wait [#allocation4], 8192  }
 0x128   :  { %779 = vsyncadd [#allocation4], 4294959104 }
 0x129   :  { %660 = vsyncpa [#allocation3], 1 }
 0x12a   :  { %661 = vsyncpa [#allocation4], 1 }

</bundles_post_ra>
